<compile_context>
chip_gen: v7x
topology: tpu7x:2x2x1
jax: 0.10.0
libtpu: 0.0.40
codegen_flags: <defaults>
</compile_context>

<pallas_src>
import jax
import jax.numpy as jnp
from jax.experimental import pallas as pl
from jax.experimental.pallas import tpu as pltpu

D_IN = 23      # self.input_size
HID = 60       # hidden layer width
D_OUT = 6      # self.number_of_actions

PACK = 4       # batch rows packed per MXU row via block-diagonal weights

_TB_BUCKETS = (256, 1024, 2048)   # packed-row tile sizes (fixed -> few compiles)


def _round_up(n, m):
    return ((n + m - 1) // m) * m


def _pick_tb(rows):
    """Fixed-bucket tile size; keep >=2 grid steps when possible (v7x: 2 TCs)."""
    half = -(-rows // 2)
    for tb in _TB_BUCKETS:
        if tb >= half:
            return tb
    return _TB_BUCKETS[-1]


def _block_diag(w, p):
    """(k, n) -> (p*k, p*n) block-diagonal matrix with p copies of w."""
    k, n = w.shape
    eye = jnp.eye(p, dtype=w.dtype)
    return (eye[:, None, :, None] * w[None, :, None, :]).reshape(p * k, p * n)


def dqn_kernel(x_ref, w1_ref, b1_ref, w2_ref, b2_ref, out_ref):
    """Fused packed-MLP tile: out = relu(x @ W1p + b1p) @ W2p + b2p."""
    x = x_ref[...].astype(jnp.bfloat16)                       # (TB, P*23) in-kernel cast
    h = jnp.dot(x, w1_ref[...], preferred_element_type=jnp.float32)
    h = jnp.maximum(h + b1_ref[...], 0.0)                     # (TB, P*60) f32
    o = jnp.dot(h.astype(jnp.bfloat16), w2_ref[...],
                preferred_element_type=jnp.float32)           # (TB, P*6) f32
    out_ref[...] = o + b2_ref[...]


def prepare_params(w1, b1, w2, b2):
    """One-time parameter prep (block-diagonal packing + casts). Reuse per call."""
    w1p = _block_diag(w1.astype(jnp.float32), PACK).astype(jnp.bfloat16)   # (P*23, P*60)
    w2p = _block_diag(w2.astype(jnp.float32), PACK).astype(jnp.bfloat16)   # (P*60, P*6)
    b1p = jnp.tile(b1.astype(jnp.float32), PACK).reshape(1, PACK * HID)    # (1, P*60)
    b2p = jnp.tile(b2.astype(jnp.float32), PACK).reshape(1, PACK * D_OUT)  # (1, P*6)
    return (w1p, b1p, w2p, b2p)


def dqn_forward(x, params):
    """x: (B, 23) float32. params: prepare_params output. Returns (B, 6) float32."""
    w1p, b1p, w2p, b2p = params
    B = x.shape[0]

    # Tiny pad so the packed reshape is valid (only when B % PACK != 0).
    Bp = _round_up(max(B, 1), PACK)
    if Bp != B:
        x = jnp.concatenate([x, jnp.zeros((Bp - B, D_IN), x.dtype)], axis=0)

    rows = Bp // PACK
    xg = x.reshape(rows, PACK * D_IN)      # free contiguous reshape

    TB = _pick_tb(rows)
    grid = (pl.cdiv(rows, TB),)            # ragged last block: Pallas masks writes

    out = pl.pallas_call(
        dqn_kernel,
        out_shape=jax.ShapeDtypeStruct((rows, PACK * D_OUT), jnp.float32),
        grid=grid,
        in_specs=[
            # batch-varying packed activation tile
            pl.BlockSpec((TB, PACK * D_IN), lambda i: (i, 0)),
            # weights / biases: constant index maps -> stay VMEM-resident
            pl.BlockSpec((PACK * D_IN, PACK * HID), lambda i: (0, 0)),
            pl.BlockSpec((1, PACK * HID), lambda i: (0, 0)),
            pl.BlockSpec((PACK * HID, PACK * D_OUT), lambda i: (0, 0)),
            pl.BlockSpec((1, PACK * D_OUT), lambda i: (0, 0)),
        ],
        out_specs=pl.BlockSpec((TB, PACK * D_OUT), lambda i: (i, 0)),
        compiler_params=pltpu.CompilerParams(
            dimension_semantics=("parallel",)),
    )(xg, w1p, b1p, w2p, b2p)

    out = out.reshape(Bp, D_OUT)
    return out[:B] if Bp != B else out


def init_params(key):
    """Deterministic init mimicking torch.nn.Linear default (U[-1/sqrt(fan_in), +])."""
    k1, k2, k3, k4 = jax.random.split(key, 4)
    bound1 = 1.0 / jnp.sqrt(jnp.float32(D_IN))
    bound2 = 1.0 / jnp.sqrt(jnp.float32(HID))
    # stored as (in_features, out_features) so the kernel does x @ W
    w1 = jax.random.uniform(k1, (D_IN, HID), jnp.float32, -bound1, bound1)
    b1 = jax.random.uniform(k2, (HID,), jnp.float32, -bound1, bound1)
    w2 = jax.random.uniform(k3, (HID, D_OUT), jnp.float32, -bound2, bound2)
    b2 = jax.random.uniform(k4, (D_OUT,), jnp.float32, -bound2, bound2)
    return w1, b1, w2, b2


def _reference(x, w1, b1, w2, b2):
    return jnp.maximum(x @ w1 + b1, 0.0) @ w2 + b2


if __name__ == "__main__":
    key = jax.random.PRNGKey(0)
    k_param, k_x1, k_x2, k_x3 = jax.random.split(key, 4)
    w1, b1, w2, b2 = init_params(k_param)
    params = prepare_params(w1, b1, w2, b2)   # one-time prep, reused per call

    # small batch: needs the tiny pad-to-PACK path, single ragged block
    B1 = 2
    x1 = jax.random.normal(k_x1, (B1, D_IN), jnp.float32)
    out1 = jax.block_until_ready(dqn_forward(x1, params))
    ref1 = _reference(x1, w1, b1, w2, b2)
    assert out1.shape == (B1, D_OUT)
    assert jnp.allclose(out1, ref1, atol=5e-2, rtol=5e-2)

    # larger batch: multiple grid steps with a ragged last block (rows=375, TB=256)
    B2 = 1500
    x2 = jax.random.normal(k_x2, (B2, D_IN), jnp.float32)
    out2 = jax.block_until_ready(dqn_forward(x2, params))
    ref2 = _reference(x2, w1, b1, w2, b2)
    assert out2.shape == (B2, D_OUT)
    assert jnp.allclose(out2, ref2, atol=5e-2, rtol=5e-2)

    # exact-multiple batch: two full tiles, no pad / no slice path
    B3 = 2048
    x3 = jax.random.normal(k_x3, (B3, D_IN), jnp.float32)
    out3 = jax.block_until_ready(dqn_forward(x3, params))
    ref3 = _reference(x3, w1, b1, w2, b2)
    assert out3.shape == (B3, D_OUT)
    assert jnp.allclose(out3, ref3, atol=5e-2, rtol=5e-2)

    print("KERNEL_OK")
</pallas_src>

<mosaic_0001>
module attributes {stable_mosaic.version = 11 : i64} {
  func.func @dqn_kernel(%arg0: i32, %arg1: memref<256x92xf32, #tpu.memory_space<vmem>>, %arg2: memref<92x240xbf16, #tpu.memory_space<vmem>>, %arg3: memref<1x240xf32, #tpu.memory_space<vmem>>, %arg4: memref<240x24xbf16, #tpu.memory_space<vmem>>, %arg5: memref<1x24xf32, #tpu.memory_space<vmem>>, %arg6: memref<256x24xf32, #tpu.memory_space<vmem>>) attributes {dimension_semantics = [#tpu.dimension_semantics<parallel>], iteration_bounds = array<i64: 1>, scalar_prefetch = 0 : i64, scratch_operands = 0 : i64, tpu.core_type = #tpu.core_type<tc>, window_params = [{transform_indices = @transform_0, window_bounds = array<i64: 256, 92>}, {pipeline_mode = #tpu.pipeline_mode<synchronous>, transform_indices = @transform_1, window_bounds = array<i64: 92, 240>}, {pipeline_mode = #tpu.pipeline_mode<synchronous>, transform_indices = @transform_2, window_bounds = array<i64: 1, 240>}, {pipeline_mode = #tpu.pipeline_mode<synchronous>, transform_indices = @transform_3, window_bounds = array<i64: 240, 24>}, {pipeline_mode = #tpu.pipeline_mode<synchronous>, transform_indices = @transform_4, window_bounds = array<i64: 1, 24>}, {transform_indices = @transform_5, window_bounds = array<i64: 256, 24>}]} {
    %c0 = arith.constant 0 : index
    %c0_0 = arith.constant 0 : index
    %0 = vector.load %arg1[%c0, %c0_0] : memref<256x92xf32, #tpu.memory_space<vmem>>, vector<256x92xf32>
    %1 = arith.truncf %0 : vector<256x92xf32> to vector<256x92xbf16>
    %c0_1 = arith.constant 0 : index
    %c0_2 = arith.constant 0 : index
    %2 = vector.load %arg2[%c0_1, %c0_2] : memref<92x240xbf16, #tpu.memory_space<vmem>>, vector<92x240xbf16>
    %cst = arith.constant dense<0.000000e+00> : vector<256x240xf32>
    %3 = tpu.matmul %1, %2, %cst {dimension_numbers = #tpu.dot_dimension_numbers<[1], [0], [0], [1], [0, 0, 1, 1], [], []>} : vector<256x92xbf16>, vector<92x240xbf16>, vector<256x240xf32> -> vector<256x240xf32>
    %c0_3 = arith.constant 0 : index
    %c0_4 = arith.constant 0 : index
    %4 = vector.load %arg3[%c0_3, %c0_4] : memref<1x240xf32, #tpu.memory_space<vmem>>, vector<1x240xf32>
    %5 = vector.broadcast %4 : vector<1x240xf32> to vector<256x240xf32>
    %6 = arith.addf %3, %5 : vector<256x240xf32>
    %cst_5 = arith.constant 0.000000e+00 : f32
    %7 = vector.broadcast %cst_5 : f32 to vector<256x240xf32>
    %8 = arith.maximumf %6, %7 : vector<256x240xf32>
    %9 = arith.truncf %8 : vector<256x240xf32> to vector<256x240xbf16>
    %c0_6 = arith.constant 0 : index
    %c0_7 = arith.constant 0 : index
    %10 = vector.load %arg4[%c0_6, %c0_7] : memref<240x24xbf16, #tpu.memory_space<vmem>>, vector<240x24xbf16>
    %cst_8 = arith.constant dense<0.000000e+00> : vector<256x24xf32>
    %11 = tpu.matmul %9, %10, %cst_8 {dimension_numbers = #tpu.dot_dimension_numbers<[1], [0], [0], [1], [0, 0, 1, 1], [], []>} : vector<256x240xbf16>, vector<240x24xbf16>, vector<256x24xf32> -> vector<256x24xf32>
    %c0_9 = arith.constant 0 : index
    %c0_10 = arith.constant 0 : index
    %12 = vector.load %arg5[%c0_9, %c0_10] : memref<1x24xf32, #tpu.memory_space<vmem>>, vector<1x24xf32>
    %13 = vector.broadcast %12 : vector<1x24xf32> to vector<256x24xf32>
    %14 = arith.addf %11, %13 : vector<256x24xf32>
    %c0_11 = arith.constant 0 : index
    %c0_12 = arith.constant 0 : index
    %15 = vector.load %arg6[%c0_11, %c0_12] : memref<256x24xf32, #tpu.memory_space<vmem>>, vector<256x24xf32>
    tpu.vector_store %arg6[%c0_11, %c0_12], %14 {strides = array<i32>} : memref<256x24xf32, #tpu.memory_space<vmem>>, vector<256x24xf32>,
    return
  }
  func.func @transform_0(%arg0: i32) -> (i32, i32) {
    %c0_i32 = arith.constant 0 : i32
    %c0_i32_0 = arith.constant 0 : i32
    return %arg0, %c0_i32 : i32, i32
  }
  func.func @transform_1(%arg0: i32) -> (i32, i32) {
    %c0_i32 = arith.constant 0 : i32
    %c0_i32_0 = arith.constant 0 : i32
    %c0_i32_1 = arith.constant 0 : i32
    return %c0_i32, %c0_i32_0 : i32, i32
  }
  func.func @transform_2(%arg0: i32) -> (i32, i32) {
    %c0_i32 = arith.constant 0 : i32
    %c0_i32_0 = arith.constant 0 : i32
    %c0_i32_1 = arith.constant 0 : i32
    return %c0_i32, %c0_i32_0 : i32, i32
  }
  func.func @transform_3(%arg0: i32) -> (i32, i32) {
    %c0_i32 = arith.constant 0 : i32
    %c0_i32_0 = arith.constant 0 : i32
    %c0_i32_1 = arith.constant 0 : i32
    return %c0_i32, %c0_i32_0 : i32, i32
  }
  func.func @transform_4(%arg0: i32) -> (i32, i32) {
    %c0_i32 = arith.constant 0 : i32
    %c0_i32_0 = arith.constant 0 : i32
    %c0_i32_1 = arith.constant 0 : i32
    return %c0_i32, %c0_i32_0 : i32, i32
  }
  func.func @transform_5(%arg0: i32) -> (i32, i32) {
    %c0_i32 = arith.constant 0 : i32
    %c0_i32_0 = arith.constant 0 : i32
    return %arg0, %c0_i32 : i32, i32
  }
}

</mosaic_0001>

<bundles_post_ra>
// kernel: tpu_custom_call.1
= control target key start
LH: loop header
LB: loop body
LE: loop exit
PB: predicated region body
PF: predicated region fallthrough
CT: control target
= control target key end

     0   :  { %10 = vsyncpa [#allocation3], 0  ;;  %v1035_v2 = vmov 0   ;;  %vm201_vm0 = vcmask 1045504   ;;  %vm152_vm1 = vcmask 752640   ;;  %vm624_vm2 = vcmask 916480   ;;  %s1476_s0 = inlined_call_operand.vmem [shape: f32[1,92], index: 0, kind: input, shape index: {}]   ;;  %s1477_s1 = inlined_call_operand.vmem [shape: bf16[92,240], index: 1, kind: input, shape index: {}]   ;;  %s1478_s2 = inlined_call_operand.vmem [shape: f32[1,240], index: 2, kind: input, shape index: {}]   ;;  %s1479_s3 = inlined_call_operand.vmem [shape: bf16[240,24], index: 3, kind: input, shape index: {}]   ;;  %s1480_s4 = inlined_call_operand.vmem [shape: f32[1,24], index: 4, kind: input, shape index: {}]   ;;  %s1481_s5 = inlined_call_operand.hbm [shape: f32[1,24], index: 5, kind: output, shape index: {}]  }
   0x1   :  { %v978_v0 = vld [vmem:[%s1477_s1 + $0x4] ss:$8 sps:$4 sm:$0xff]   ;;  %v980_v1 = vld [vmem:[%s1477_s1] ss:$8 sps:$4 sm:$0xff]   ;;  %240 = vmatprep.mubr.bf16.mxu0 %v1035_v2  ;;  %944 = vmatprep.subr.bf16.mxu1 %v1035_v2  ;;  %v981_v3 = vld [vmem:[%s1477_s1 + $0x14] ss:$8 sps:$4 sm:$0xff]  }
   0x2   :  { %208 = vmatprep.subr.bf16.mxu0 %v978_v0  ;;  %v983_v4 = vld [vmem:[%s1477_s1 + $0x10] ss:$8 sps:$4 sm:$0xff]   ;;  %v984_v5 = vld [vmem:[%s1477_s1 + $0x24] ss:$8 sps:$4 sm:$0xff]   ;;  %v986_v6 = vld [vmem:[%s1477_s1 + $0x20] ss:$8 sps:$4 sm:$0xff]  }
   0x3   :  { %209 = vmatpush1.bf16.msra.mxu0 %v980_v1  ;;  %v987_v7 = vld [vmem:[%s1477_s1 + $0x34] ss:$8 sps:$4 sm:$0xff]   ;;  %v989_v8 = vld [vmem:[%s1477_s1 + $0x30] ss:$8 sps:$4 sm:$0xff]   ;;  %v990_v9 = vld [vmem:[%s1477_s1 + $0x44] ss:$8 sps:$4 sm:$0xff]  }
   0x4   :  { %210 = vmatprep.subr.bf16.mxu0 %v981_v3  ;;  %v992_v10 = vld [vmem:[%s1477_s1 + $0x40] ss:$8 sps:$4 sm:$0xff]   ;;  %v993_v11 = vld [vmem:[%s1477_s1 + $0x54] ss:$8 sps:$4 sm:$0x3f]   ;;  %vm834_vm3 = vcmask 195584  }
   0x5   :  { %v995_v12 = vld [vmem:[%s1477_s1 + $0x50] ss:$8 sps:$4 sm:$0x3f]   ;;  %v22_v13 = vld [vmem:[%s1476_s0] sm:$0xff]  ;;  %v23_v15 = vld [vmem:[%s1476_s0 + $0x8] sm:$0xff] }
   0x6   :  { %v996_v14 = vld [vmem:[%s1479_s3] sm:$0xff]   ;;  %v203_v16 = vsel %vm201_vm0, %v995_v12, 0  ;;  %v54_v17 = vpack.c.bf16 %v23_v15, %v22_v13  ;;  %v997_v18 = vld [vmem:[%s1479_s3 + $0x8] sm:$0xff]   ;;  %v24_v19 = vld [vmem:[%s1476_s0 + $0x10] sm:$0xff] }
   0x7   :  { %211 = vmatpush1.bf16.msra.mxu0 %v983_v4  ;;  %959 = vmatpush1.bf16.msra.mxu1 %v996_v14  ;;  %v998_v20 = vld [vmem:[%s1479_s3 + $0x10] sm:$0xff]   ;;  %v25_v21 = vld [vmem:[%s1476_s0 + $0x18] sm:$0xff]  ;;  %v1000_v24 = vld [vmem:[%s1479_s3 + $0x20] sm:$0xff]  }
   0x8   :  { %212 = vmatprep.subr.bf16.mxu0 %v984_v5  ;;  %945 = vmatprep.subr.bf16.mxu1 %v1035_v2  ;;  %v55_v22 = vpack.c.bf16 %v25_v21, %v24_v19  ;;  %v999_v23 = vld [vmem:[%s1479_s3 + $0x18] sm:$0xff]   ;;  %v26_v25 = vld [vmem:[%s1476_s0 + $0x20] sm:$0xff]  ;;  %v27_v26 = vld [vmem:[%s1476_s0 + $0x28] sm:$0xff] }
   0x9   :  { %v56_v27 = vpack.c.bf16 %v27_v26, %v26_v25  ;;  %v1001_v28 = vld [vmem:[%s1479_s3 + $0x28] sm:$0xff]   ;;  %v1002_v29 = vld [vmem:[%s1479_s3 + $0x30] sm:$0xff]   ;;  %v29_v31 = vld [vmem:[%s1476_s0 + $0x38] sm:$0xff] }
   0xa   :  { %v28_v30 = vld [vmem:[%s1476_s0 + $0x30] sm:$0xff]  ;;  %v1003_v33 = vld [vmem:[%s1479_s3 + $0x38] sm:$0xff]   ;;  %v1004_v34 = vld [vmem:[%s1479_s3 + $0x40] sm:$0xff]  }
   0xb   :  { %213 = vmatpush1.bf16.msra.mxu0 %v986_v6  ;;  %960 = vmatpush1.bf16.msra.mxu1 %v997_v18  ;;  %v57_v32 = vpack.c.bf16 %v29_v31, %v28_v30  ;;  %v30_v35 = vld [vmem:[%s1476_s0 + $0x40] sm:$0xff]  ;;  %v31_v36 = vld [vmem:[%s1476_s0 + $0x48] sm:$0xff]  ;;  %v1006_v39 = vld [vmem:[%s1479_s3 + $0x50] sm:$0xff]  }
   0xc   :  { %214 = vmatprep.subr.bf16.mxu0 %v987_v7  ;;  %946 = vmatprep.subr.bf16.mxu1 %v1035_v2  ;;  %v58_v37 = vpack.c.bf16 %v31_v36, %v30_v35  ;;  %v1005_v38 = vld [vmem:[%s1479_s3 + $0x48] sm:$0xff]   ;;  %v32_v40 = vld [vmem:[%s1476_s0 + $0x50] sm:$0xff]  ;;  %v33_v41 = vld [vmem:[%s1476_s0 + $0x58] sm:$0xff] }
   0xd   :  { %v59_v42 = vpack.c.bf16 %v33_v41, %v32_v40  ;;  %v1007_v43 = vld [vmem:[%s1479_s3 + $0x58] sm:$0xff]   ;;  %v34_v44 = vld [vmem:[%s1476_s0 + $0x60] sm:$0xff]  ;;  %v35_v45 = vld [vmem:[%s1476_s0 + $0x68] sm:$0xff] }
   0xe   :  { %v60_v46 = vpack.c.bf16 %v35_v45, %v34_v44  ;;  %v36_v47 = vld [vmem:[%s1476_s0 + $0x70] sm:$0xff]  ;;  %v37_v48 = vld [vmem:[%s1476_s0 + $0x78] sm:$0xff]  ;;  %v38_v50 = vld [vmem:[%s1476_s0 + $0x80] sm:$0xff] }
   0xf   :  { %215 = vmatpush1.bf16.msra.mxu0 %v989_v8  ;;  %961 = vmatpush1.bf16.msra.mxu1 %v998_v20  ;;  %v61_v49 = vpack.c.bf16 %v37_v48, %v36_v47  ;;  %v39_v51 = vld [vmem:[%s1476_s0 + $0x88] sm:$0xff]  ;;  %v40_v53 = vld [vmem:[%s1476_s0 + $0x90] sm:$0xff]  ;;  %v41_v54 = vld [vmem:[%s1476_s0 + $0x98] sm:$0xff] }
  0x10   :  { %216 = vmatprep.subr.bf16.mxu0 %v990_v9  ;;  %947 = vmatprep.subr.bf16.mxu1 %v1035_v2  ;;  %v62_v52 = vpack.c.bf16 %v39_v51, %v38_v50  ;;  %v63_v55 = vpack.c.bf16 %v41_v54, %v40_v53  ;;  %v42_v56 = vld [vmem:[%s1476_s0 + $0xa0] sm:$0xff]  ;;  %v43_v57 = vld [vmem:[%s1476_s0 + $0xa8] sm:$0xff]  ;;  %v44_v59 = vld [vmem:[%s1476_s0 + $0xb0] sm:$0xff] }
  0x11   :  { %v64_v58 = vpack.c.bf16 %v43_v57, %v42_v56  ;;  %v45_v60 = vld [vmem:[%s1476_s0 + $0xb8] sm:$0xff]  ;;  %v1008_v61 = vld [vmem:[%s1479_s3 + $0x60] sm:$0xff]   ;;  %v1009_v63 = vld [vmem:[%s1479_s3 + $0x68] sm:$0xff]  }
  0x12   :  { %v65_v62 = vpack.c.bf16 %v45_v60, %v44_v59  ;;  %v46_v0 = vld [vmem:[%s1476_s0 + $0xc0] sm:$0xff]  ;;  %v47_v1 = vld [vmem:[%s1476_s0 + $0xc8] sm:$0xff]  ;;  %v1010_v3 = vld [vmem:[%s1479_s3 + $0x70] sm:$0xff]  }
  0x13   :  { %217 = vmatpush1.bf16.msra.mxu0 %v992_v10  ;;  %962 = vmatpush1.bf16.msra.mxu1 %v999_v23  ;;  %v66_v4 = vpack.c.bf16 %v47_v1, %v46_v0  ;;  %v48_v5 = vld [vmem:[%s1476_s0 + $0xd0] sm:$0xff]  ;;  %v49_v6 = vld [vmem:[%s1476_s0 + $0xd8] sm:$0xff]  ;;  %v50_v8 = vld [vmem:[%s1476_s0 + $0xe0] sm:$0xff] }
  0x14   :  { %895 = vmatprep.subr.msk.bf16.mxu0 %vm201_vm0, %v993_v11  ;;  %948 = vmatprep.subr.bf16.mxu1 %v1035_v2  ;;  %v67_v7 = vpack.c.bf16 %v49_v6, %v48_v5  ;;  %v51_v9 = vld [vmem:[%s1476_s0 + $0xe8] sm:$0xff]  ;;  %v52_v11 = vld [vmem:[%s1476_s0 + $0xf0] sm:$0xff]  ;;  %v53_v12 = vld [vmem:[%s1476_s0 + $0xf8] sm:$0xff] }
  0x15   :  { %v68_v10 = vpack.c.bf16 %v51_v9, %v50_v8  ;;  %v69_v13 = vpack.c.bf16 %v53_v12, %v52_v11 }
  0x17   :  { %219 = vmatpush1.bf16.msra.mxu0 %v203_v16  ;;  %963 = vmatpush1.bf16.msra.mxu1 %v1000_v24 }
  0x18   :  { %673 = vmatprep.subr.bf16.mxu0 %v1035_v2  ;;  %949 = vmatprep.subr.bf16.mxu1 %v1035_v2 }
  0x1a   :  { %896 = vmatmul.mubr.msk.bf16.vlgmr.msra.gmra.mrb[0].mxu0 %vm152_vm1, %v54_v17  ;;  %v82_v17 = vld [vmem:[%s1478_s2] sm:$0x3] }
  0x1b   :  { %250 = vmatprep.mubr.bf16.mxu0 %v1035_v2  ;;  %674 = vmatpush1.bf16.msra.mxu0 %v996_v14  ;;  %v84_v14 = vlaneseq }
  0x1c   :  { %675 = vmatprep.subr.bf16.mxu0 %v1035_v2  ;;  %964 = vmatpush1.bf16.msra.mxu1 %v1001_v28 }
  0x1d   :  { %950 = vmatprep.subr.bf16.mxu1 %v1035_v2  ;;  %v85_v15 = vshrl.u32 %v84_v14, 7 }
  0x1f   :  { %676 = vmatpush1.bf16.msra.mxu0 %v997_v18  ;;  %v86_v16 = vsub.s32 0, %v85_v15  ;;  %v90_v18 = vsub.s32 1, %v85_v15 }
  0x20   :  { %677 = vmatprep.subr.bf16.mxu0 %v1035_v2  ;;  %965 = vmatpush1.bf16.msra.mxu1 %v1002_v29 }
  0x21   :  { %951 = vmatprep.subr.bf16.mxu1 %v1035_v2  ;;  %v1313_v19 = vrot.slane %v82_v17, %v90_v18 }
  0x22   :  { %897 = vmatmul.mubr.msk.bf16.gmra.mrb[4].mxu0 %vm152_vm1, %v55_v22 }
  0x23   :  { %260 = vmatprep.mubr.bf16.mxu0 %v1035_v2  ;;  %678 = vmatpush1.bf16.msra.mxu0 %v998_v20 }
  0x24   :  { %679 = vmatprep.subr.bf16.mxu0 %v1035_v2  ;;  %966 = vmatpush1.bf16.msra.mxu1 %v1003_v33 }
  0x25   :  { %952 = vmatprep.subr.bf16.mxu1 %v1035_v2 }
  0x27   :  { %680 = vmatpush1.bf16.msra.mxu0 %v999_v23 }
  0x28   :  { %681 = vmatprep.subr.bf16.mxu0 %v1035_v2  ;;  %967 = vmatpush1.bf16.msra.mxu1 %v1004_v34 }
  0x29   :  { %953 = vmatprep.subr.bf16.mxu1 %v1035_v2 }
  0x2a   :  { %898 = vmatmul.mubr.msk.bf16.gmra.mrb[8].mxu0 %vm152_vm1, %v56_v27 }
  0x2b   :  { %270 = vmatprep.mubr.bf16.mxu0 %v1035_v2  ;;  %682 = vmatpush1.bf16.msra.mxu0 %v1000_v24 }
  0x2c   :  { %683 = vmatprep.subr.bf16.mxu0 %v1035_v2  ;;  %968 = vmatpush1.bf16.msra.mxu1 %v1005_v38 }
  0x2d   :  { %954 = vmatprep.subr.bf16.mxu1 %v1035_v2 }
  0x2f   :  { %684 = vmatpush1.bf16.msra.mxu0 %v1001_v28 }
  0x30   :  { %685 = vmatprep.subr.bf16.mxu0 %v1035_v2  ;;  %969 = vmatpush1.bf16.msra.mxu1 %v1006_v39 }
  0x31   :  { %955 = vmatprep.subr.bf16.mxu1 %v1035_v2 }
  0x32   :  { %899 = vmatmul.mubr.msk.bf16.gmra.mrb[12].mxu0 %vm152_vm1, %v57_v32 }
  0x33   :  { %280 = vmatprep.mubr.bf16.mxu0 %v1035_v2  ;;  %686 = vmatpush1.bf16.msra.mxu0 %v1002_v29 }
  0x34   :  { %687 = vmatprep.subr.bf16.mxu0 %v1035_v2  ;;  %970 = vmatpush1.bf16.msra.mxu1 %v1007_v43 }
  0x35   :  { %956 = vmatprep.subr.bf16.mxu1 %v1035_v2 }
  0x37   :  { %688 = vmatpush1.bf16.msra.mxu0 %v1003_v33 }
  0x38   :  { %689 = vmatprep.subr.bf16.mxu0 %v1035_v2  ;;  %971 = vmatpush1.bf16.msra.mxu1 %v1008_v61 }
  0x39   :  { %957 = vmatprep.subr.bf16.mxu1 %v1035_v2 }
  0x3a   :  { %900 = vmatmul.mubr.msk.bf16.gmra.mrb[16].mxu0 %vm152_vm1, %v58_v37 }
  0x3b   :  { %290 = vmatprep.mubr.bf16.mxu0 %v1035_v2  ;;  %690 = vmatpush1.bf16.msra.mxu0 %v1004_v34 }
  0x3c   :  { %691 = vmatprep.subr.bf16.mxu0 %v1035_v2  ;;  %972 = vmatpush1.bf16.msra.mxu1 %v1009_v63 }
  0x3d   :  { %958 = vmatprep.subr.bf16.mxu1 %v1035_v2 }
  0x3f   :  { %692 = vmatpush1.bf16.msra.mxu0 %v1005_v38 }
  0x40   :  { %693 = vmatprep.subr.bf16.mxu0 %v1035_v2  ;;  %973 = vmatpush1.bf16.msra.mxu1 %v1010_v3 }
  0x42   :  { %901 = vmatmul.mubr.msk.bf16.gmra.mrb[20].mxu0 %vm152_vm1, %v59_v42 }
  0x43   :  { %300 = vmatprep.mubr.bf16.mxu0 %v1035_v2  ;;  %694 = vmatpush1.bf16.msra.mxu0 %v1006_v39 }
  0x44   :  { %695 = vmatprep.subr.bf16.mxu0 %v1035_v2 }
  0x47   :  { %696 = vmatpush1.bf16.msra.mxu0 %v1007_v43 }
  0x48   :  { %697 = vmatprep.subr.bf16.mxu0 %v1035_v2 }
  0x4a   :  { %902 = vmatmul.mubr.msk.bf16.gmra.mrb[24].mxu0 %vm152_vm1, %v60_v46 }
  0x4b   :  { %310 = vmatprep.mubr.bf16.mxu0 %v1035_v2  ;;  %698 = vmatpush1.bf16.msra.mxu0 %v1008_v61 }
  0x4c   :  { %699 = vmatprep.subr.bf16.mxu0 %v1035_v2 }
  0x4f   :  { %700 = vmatpush1.bf16.msra.mxu0 %v1009_v63 }
  0x50   :  { %701 = vmatprep.subr.bf16.mxu0 %v1035_v2 }
  0x52   :  { %903 = vmatmul.mubr.msk.bf16.gmra.mrb[28].mxu0 %vm152_vm1, %v61_v49 }
  0x53   :  { %320 = vmatprep.mubr.bf16.mxu0 %v1035_v2  ;;  %702 = vmatpush1.bf16.msra.mxu0 %v1010_v3 }
  0x5a   :  { %904 = vmatmul.mubr.msk.bf16.gmra.mrb[32].mxu0 %vm152_vm1, %v62_v52 }
  0x5b   :  { %330 = vmatprep.mubr.bf16.mxu0 %v1035_v2 }
  0x62   :  { %905 = vmatmul.mubr.msk.bf16.gmra.mrb[36].mxu0 %vm152_vm1, %v63_v55 }
  0x63   :  { %340 = vmatprep.mubr.bf16.mxu0 %v1035_v2 }
  0x6a   :  { %906 = vmatmul.mubr.msk.bf16.gmra.mrb[40].mxu0 %vm152_vm1, %v64_v58 }
  0x6b   :  { %350 = vmatprep.mubr.bf16.mxu0 %v1035_v2 }
  0x72   :  { %907 = vmatmul.mubr.msk.bf16.gmra.mrb[44].mxu0 %vm152_vm1, %v65_v62 }
  0x73   :  { %360 = vmatprep.mubr.bf16.mxu0 %v1035_v2 }
  0x7a   :  { %908 = vmatmul.mubr.msk.bf16.gmra.mrb[48].mxu0 %vm152_vm1, %v66_v4 }
  0x7b   :  { %370 = vmatprep.mubr.bf16.mxu0 %v1035_v2 }
  0x82   :  { %909 = vmatmul.mubr.msk.bf16.gmra.mrb[52].mxu0 %vm152_vm1, %v67_v7 }
  0x83   :  { %380 = vmatprep.mubr.bf16.mxu0 %v1035_v2 }
  0x8a   :  { %910 = vmatmul.mubr.msk.bf16.gmra.mrb[56].mxu0 %vm152_vm1, %v68_v10 }
  0x8b   :  { %390 = vmatprep.mubr.bf16.mxu0 %v1035_v2  ;;  %v1311_v2 = vrot.slane %v82_v17, %v86_v16 }
  0x92   :  { %911 = vmatmul.mubr.msk.bf16.gmra.mrb[60].mxu0 %vm152_vm1, %v69_v13 }
  0xed   :  { %v242_v20 = vpop.f32.mrb[0].mxu0 }
  0xee   :  { %v243_v21 = vadd.f32 %v242_v20, %v1311_v2  ;;  %v244_v22 = vpop.f32.mrb[1].mxu0 }
  0xef   :  { %v245_v23 = vadd.f32 %v244_v22, %v1313_v19  ;;  %v246_v24 = vpop.f32.mrb[2].mxu0 }
  0xf0   :  { %v247_v25 = vadd.f32 %v246_v24, %v1311_v2  ;;  %v248_v26 = vpop.f32.mrb[3].mxu0  ;;  %v401_v28 = vmax.f32 %v243_v21, 0.0 }
  0xf1   :  { %v249_v27 = vadd.f32 %v248_v26, %v1313_v19  ;;  %v402_v30 = vmax.f32 %v245_v23, 0.0 }
  0xf2   :  { %v403_v29 = vmax.f32 %v247_v25, 0.0 }
  0xf3   :  { %v404_v31 = vmax.f32 %v249_v27, 0.0 }
  0xf4   :  { %v465_v32 = vpack.c.bf16 %v403_v29, %v401_v28 }
  0xf5   :  { %v466_v33 = vpack.c.bf16 %v404_v31, %v402_v30  ;;  %v252_v34 = vpop.f32.mrb[4].mxu0 }
  0xf6   :  { %v253_v35 = vadd.f32 %v252_v34, %v1311_v2  ;;  %v254_v36 = vpop.f32.mrb[5].mxu0 }
  0xf7   :  { %v255_v37 = vadd.f32 %v254_v36, %v1313_v19  ;;  %v256_v38 = vpop.f32.mrb[6].mxu0  ;;  %928 = vmatprep.mubr.msk.bf16.mxu0 %vm624_vm2, %v466_v33 }
  0xf8   :  { %v257_v39 = vadd.f32 %v256_v38, %v1311_v2  ;;  %v258_v40 = vpop.f32.mrb[7].mxu0  ;;  %706 = vmatmul.mubr.bf16.vlgmr.msra.gmra.mrb[64].mxu0 %v465_v32  ;;  %v405_v42 = vmax.f32 %v253_v35, 0.0 }
  0xf9   :  { %v259_v41 = vadd.f32 %v258_v40, %v1313_v19  ;;  %v406_v44 = vmax.f32 %v255_v37, 0.0 }
  0xfa   :  { %v407_v43 = vmax.f32 %v257_v39, 0.0 }
  0xfb   :  { %v408_v45 = vmax.f32 %v259_v41, 0.0 }
  0xfc   :  { %v467_v46 = vpack.c.bf16 %v407_v43, %v405_v42 }
  0xfd   :  { %v468_v47 = vpack.c.bf16 %v408_v45, %v406_v44  ;;  %v262_v48 = vpop.f32.mrb[8].mxu0 }
  0xfe   :  { %v263_v49 = vadd.f32 %v262_v48, %v1311_v2  ;;  %v264_v50 = vpop.f32.mrb[9].mxu0 }
  0xff   :  { %v265_v51 = vadd.f32 %v264_v50, %v1313_v19  ;;  %v266_v52 = vpop.f32.mrb[10].mxu0  ;;  %929 = vmatprep.mubr.msk.bf16.mxu0 %vm624_vm2, %v468_v47 }
 0x100   :  { %v267_v53 = vadd.f32 %v266_v52, %v1311_v2  ;;  %v268_v54 = vpop.f32.mrb[11].mxu0  ;;  %714 = vmatmul.mubr.bf16.gmra.mrb[68].mxu0 %v467_v46  ;;  %v409_v56 = vmax.f32 %v263_v49, 0.0 }
 0x101   :  { %v269_v55 = vadd.f32 %v268_v54, %v1313_v19  ;;  %v410_v58 = vmax.f32 %v265_v51, 0.0 }
 0x102   :  { %v411_v57 = vmax.f32 %v267_v53, 0.0 }
 0x103   :  { %v412_v59 = vmax.f32 %v269_v55, 0.0 }
 0x104   :  { %v469_v60 = vpack.c.bf16 %v411_v57, %v409_v56 }
 0x105   :  { %v272_v61 = vpop.f32.mrb[12].mxu0  ;;  %v470_v62 = vpack.c.bf16 %v412_v59, %v410_v58 }
 0x106   :  { %v273_v63 = vadd.f32 %v272_v61, %v1311_v2  ;;  %v274_v0 = vpop.f32.mrb[13].mxu0 }
 0x107   :  { %v275_v1 = vadd.f32 %v274_v0, %v1313_v19  ;;  %v276_v3 = vpop.f32.mrb[14].mxu0  ;;  %930 = vmatprep.mubr.msk.bf16.mxu1 %vm624_vm2, %v470_v62 }
 0x108   :  { %v277_v4 = vadd.f32 %v276_v3, %v1311_v2  ;;  %v278_v5 = vpop.f32.mrb[15].mxu0  ;;  %722 = vmatmul.mubr.bf16.vlgmr.msra.gmra.mrb[0].mxu1 %v469_v60  ;;  %v413_v7 = vmax.f32 %v273_v63, 0.0 }
 0x109   :  { %v279_v6 = vadd.f32 %v278_v5, %v1313_v19  ;;  %v414_v9 = vmax.f32 %v275_v1, 0.0 }
 0x10a   :  { %v415_v8 = vmax.f32 %v277_v4, 0.0 }
 0x10b   :  { %v416_v10 = vmax.f32 %v279_v6, 0.0 }
 0x10c   :  { %v471_v11 = vpack.c.bf16 %v415_v8, %v413_v7 }
 0x10d   :  { %v472_v12 = vpack.c.bf16 %v416_v10, %v414_v9  ;;  %v282_v13 = vpop.f32.mrb[16].mxu0 }
 0x10e   :  { %v283_v14 = vadd.f32 %v282_v13, %v1311_v2  ;;  %v284_v15 = vpop.f32.mrb[17].mxu0 }
 0x10f   :  { %v285_v16 = vadd.f32 %v284_v15, %v1313_v19  ;;  %v286_v17 = vpop.f32.mrb[18].mxu0  ;;  %931 = vmatprep.mubr.msk.bf16.mxu1 %vm624_vm2, %v472_v12 }
 0x110   :  { %v287_v18 = vadd.f32 %v286_v17, %v1311_v2  ;;  %v288_v20 = vpop.f32.mrb[19].mxu0  ;;  %730 = vmatmul.mubr.bf16.gmra.mrb[4].mxu1 %v471_v11  ;;  %v417_v22 = vmax.f32 %v283_v14, 0.0 }
 0x111   :  { %v289_v21 = vadd.f32 %v288_v20, %v1313_v19  ;;  %v418_v24 = vmax.f32 %v285_v16, 0.0 }
 0x112   :  { %v419_v23 = vmax.f32 %v287_v18, 0.0 }
 0x113   :  { %v420_v25 = vmax.f32 %v289_v21, 0.0 }
 0x114   :  { %v473_v26 = vpack.c.bf16 %v419_v23, %v417_v22 }
 0x115   :  { %v474_v27 = vpack.c.bf16 %v420_v25, %v418_v24  ;;  %v292_v28 = vpop.f32.mrb[20].mxu0 }
 0x116   :  { %v293_v29 = vadd.f32 %v292_v28, %v1311_v2  ;;  %v294_v30 = vpop.f32.mrb[21].mxu0 }
 0x117   :  { %v295_v31 = vadd.f32 %v294_v30, %v1313_v19  ;;  %v296_v32 = vpop.f32.mrb[22].mxu0  ;;  %932 = vmatprep.mubr.msk.bf16.mxu1 %vm624_vm2, %v474_v27 }
 0x118   :  { %v297_v33 = vadd.f32 %v296_v32, %v1311_v2  ;;  %v298_v34 = vpop.f32.mrb[23].mxu0  ;;  %738 = vmatmul.mubr.bf16.gmra.mrb[8].mxu1 %v473_v26  ;;  %v421_v36 = vmax.f32 %v293_v29, 0.0 }
 0x119   :  { %v299_v35 = vadd.f32 %v298_v34, %v1313_v19  ;;  %v422_v38 = vmax.f32 %v295_v31, 0.0 }
 0x11a   :  { %v423_v37 = vmax.f32 %v297_v33, 0.0 }
 0x11b   :  { %v424_v39 = vmax.f32 %v299_v35, 0.0 }
 0x11c   :  { %v475_v40 = vpack.c.bf16 %v423_v37, %v421_v36 }
 0x11d   :  { %v476_v41 = vpack.c.bf16 %v424_v39, %v422_v38  ;;  %v302_v42 = vpop.f32.mrb[24].mxu0 }
 0x11e   :  { %v303_v43 = vadd.f32 %v302_v42, %v1311_v2  ;;  %v304_v44 = vpop.f32.mrb[25].mxu0 }
 0x11f   :  { %v305_v45 = vadd.f32 %v304_v44, %v1313_v19  ;;  %v306_v46 = vpop.f32.mrb[26].mxu0  ;;  %933 = vmatprep.mubr.msk.bf16.mxu1 %vm624_vm2, %v476_v41 }
 0x120   :  { %v307_v47 = vadd.f32 %v306_v46, %v1311_v2  ;;  %v308_v48 = vpop.f32.mrb[27].mxu0  ;;  %746 = vmatmul.mubr.bf16.gmra.mrb[12].mxu1 %v475_v40  ;;  %v425_v50 = vmax.f32 %v303_v43, 0.0 }
 0x121   :  { %v309_v49 = vadd.f32 %v308_v48, %v1313_v19  ;;  %v426_v52 = vmax.f32 %v305_v45, 0.0 }
 0x122   :  { %v427_v51 = vmax.f32 %v307_v47, 0.0 }
 0x123   :  { %v428_v53 = vmax.f32 %v309_v49, 0.0 }
 0x124   :  { %v477_v54 = vpack.c.bf16 %v427_v51, %v425_v50 }
 0x125   :  { %v478_v55 = vpack.c.bf16 %v428_v53, %v426_v52  ;;  %v312_v56 = vpop.f32.mrb[28].mxu0 }
 0x126   :  { %v313_v57 = vadd.f32 %v312_v56, %v1311_v2  ;;  %v314_v58 = vpop.f32.mrb[29].mxu0 }
 0x127   :  { %v315_v59 = vadd.f32 %v314_v58, %v1313_v19  ;;  %v316_v60 = vpop.f32.mrb[30].mxu0  ;;  %934 = vmatprep.mubr.msk.bf16.mxu1 %vm624_vm2, %v478_v55 }
 0x128   :  { %v317_v61 = vadd.f32 %v316_v60, %v1311_v2  ;;  %v318_v62 = vpop.f32.mrb[31].mxu0  ;;  %754 = vmatmul.mubr.bf16.gmra.mrb[16].mxu1 %v477_v54  ;;  %v429_v0 = vmax.f32 %v313_v57, 0.0 }
 0x129   :  { %v319_v63 = vadd.f32 %v318_v62, %v1313_v19  ;;  %v430_v3 = vmax.f32 %v315_v59, 0.0 }
 0x12a   :  { %v431_v1 = vmax.f32 %v317_v61, 0.0 }
 0x12b   :  { %v432_v4 = vmax.f32 %v319_v63, 0.0 }
 0x12c   :  { %v479_v5 = vpack.c.bf16 %v431_v1, %v429_v0 }
 0x12d   :  { %v480_v6 = vpack.c.bf16 %v432_v4, %v430_v3  ;;  %v322_v7 = vpop.f32.mrb[32].mxu0 }
 0x12e   :  { %v323_v8 = vadd.f32 %v322_v7, %v1311_v2  ;;  %v324_v9 = vpop.f32.mrb[33].mxu0 }
 0x12f   :  { %v325_v10 = vadd.f32 %v324_v9, %v1313_v19  ;;  %v326_v11 = vpop.f32.mrb[34].mxu0  ;;  %935 = vmatprep.mubr.msk.bf16.mxu1 %vm624_vm2, %v480_v6 }
 0x130   :  { %v327_v12 = vadd.f32 %v326_v11, %v1311_v2  ;;  %v328_v13 = vpop.f32.mrb[35].mxu0  ;;  %762 = vmatmul.mubr.bf16.gmra.mrb[20].mxu1 %v479_v5  ;;  %v433_v15 = vmax.f32 %v323_v8, 0.0 }
 0x131   :  { %v329_v14 = vadd.f32 %v328_v13, %v1313_v19  ;;  %v434_v17 = vmax.f32 %v325_v10, 0.0 }
 0x132   :  { %v435_v16 = vmax.f32 %v327_v12, 0.0 }
 0x133   :  { %v436_v18 = vmax.f32 %v329_v14, 0.0 }
 0x134   :  { %v481_v20 = vpack.c.bf16 %v435_v16, %v433_v15 }
 0x135   :  { %v482_v21 = vpack.c.bf16 %v436_v18, %v434_v17  ;;  %v332_v22 = vpop.f32.mrb[36].mxu0 }
 0x136   :  { %v333_v23 = vadd.f32 %v332_v22, %v1311_v2  ;;  %v334_v24 = vpop.f32.mrb[37].mxu0 }
 0x137   :  { %v335_v25 = vadd.f32 %v334_v24, %v1313_v19  ;;  %v336_v26 = vpop.f32.mrb[38].mxu0  ;;  %936 = vmatprep.mubr.msk.bf16.mxu1 %vm624_vm2, %v482_v21 }
 0x138   :  { %v337_v27 = vadd.f32 %v336_v26, %v1311_v2  ;;  %v338_v28 = vpop.f32.mrb[39].mxu0  ;;  %770 = vmatmul.mubr.bf16.gmra.mrb[24].mxu1 %v481_v20  ;;  %v437_v30 = vmax.f32 %v333_v23, 0.0 }
 0x139   :  { %v339_v29 = vadd.f32 %v338_v28, %v1313_v19  ;;  %v438_v32 = vmax.f32 %v335_v25, 0.0 }
 0x13a   :  { %v439_v31 = vmax.f32 %v337_v27, 0.0 }
 0x13b   :  { %v440_v33 = vmax.f32 %v339_v29, 0.0 }
 0x13c   :  { %v483_v34 = vpack.c.bf16 %v439_v31, %v437_v30 }
 0x13d   :  { %v484_v35 = vpack.c.bf16 %v440_v33, %v438_v32  ;;  %v342_v36 = vpop.f32.mrb[40].mxu0 }
 0x13e   :  { %v343_v37 = vadd.f32 %v342_v36, %v1311_v2  ;;  %v344_v38 = vpop.f32.mrb[41].mxu0 }
 0x13f   :  { %v345_v39 = vadd.f32 %v344_v38, %v1313_v19  ;;  %v346_v40 = vpop.f32.mrb[42].mxu0  ;;  %937 = vmatprep.mubr.msk.bf16.mxu1 %vm624_vm2, %v484_v35 }
 0x140   :  { %v347_v41 = vadd.f32 %v346_v40, %v1311_v2  ;;  %v348_v42 = vpop.f32.mrb[43].mxu0  ;;  %778 = vmatmul.mubr.bf16.gmra.mrb[28].mxu1 %v483_v34  ;;  %v441_v44 = vmax.f32 %v343_v37, 0.0 }
 0x141   :  { %v349_v43 = vadd.f32 %v348_v42, %v1313_v19  ;;  %v442_v46 = vmax.f32 %v345_v39, 0.0 }
 0x142   :  { %v443_v45 = vmax.f32 %v347_v41, 0.0 }
 0x143   :  { %v444_v47 = vmax.f32 %v349_v43, 0.0 }
 0x144   :  { %v485_v48 = vpack.c.bf16 %v443_v45, %v441_v44 }
 0x145   :  { %v486_v49 = vpack.c.bf16 %v444_v47, %v442_v46  ;;  %v352_v50 = vpop.f32.mrb[44].mxu0 }
 0x146   :  { %v353_v51 = vadd.f32 %v352_v50, %v1311_v2  ;;  %v354_v52 = vpop.f32.mrb[45].mxu0 }
 0x147   :  { %v355_v53 = vadd.f32 %v354_v52, %v1313_v19  ;;  %v356_v54 = vpop.f32.mrb[46].mxu0  ;;  %938 = vmatprep.mubr.msk.bf16.mxu1 %vm624_vm2, %v486_v49 }
 0x148   :  { %v357_v55 = vadd.f32 %v356_v54, %v1311_v2  ;;  %v358_v56 = vpop.f32.mrb[47].mxu0  ;;  %786 = vmatmul.mubr.bf16.gmra.mrb[32].mxu1 %v485_v48  ;;  %v445_v58 = vmax.f32 %v353_v51, 0.0 }
 0x149   :  { %v359_v57 = vadd.f32 %v358_v56, %v1313_v19  ;;  %v446_v60 = vmax.f32 %v355_v53, 0.0 }
 0x14a   :  { %v447_v59 = vmax.f32 %v357_v55, 0.0 }
 0x14b   :  { %v448_v61 = vmax.f32 %v359_v57, 0.0 }
 0x14c   :  { %v487_v62 = vpack.c.bf16 %v447_v59, %v445_v58  ;;  %v1398_v58 = vld [vmem:[%s1480_s4] ss:$0 sm:$0xff] }
 0x14d   :  { %v488_v63 = vpack.c.bf16 %v448_v61, %v446_v60  ;;  %v362_v0 = vpop.f32.mrb[48].mxu0 }
 0x14e   :  { %v363_v1 = vadd.f32 %v362_v0, %v1311_v2  ;;  %v364_v3 = vpop.f32.mrb[49].mxu0 }
 0x14f   :  { %v365_v4 = vadd.f32 %v364_v3, %v1313_v19  ;;  %v366_v5 = vpop.f32.mrb[50].mxu0  ;;  %939 = vmatprep.mubr.msk.bf16.mxu1 %vm624_vm2, %v488_v63 }
 0x150   :  { %v367_v6 = vadd.f32 %v366_v5, %v1311_v2  ;;  %v368_v7 = vpop.f32.mrb[51].mxu0  ;;  %794 = vmatmul.mubr.bf16.gmra.mrb[36].mxu1 %v487_v62  ;;  %v449_v9 = vmax.f32 %v363_v1, 0.0 }
 0x151   :  { %v369_v8 = vadd.f32 %v368_v7, %v1313_v19  ;;  %v450_v11 = vmax.f32 %v365_v4, 0.0 }
 0x152   :  { %v451_v10 = vmax.f32 %v367_v6, 0.0 }
 0x153   :  { %v452_v12 = vmax.f32 %v369_v8, 0.0 }
 0x154   :  { %v489_v13 = vpack.c.bf16 %v451_v10, %v449_v9 }
 0x155   :  { %v490_v14 = vpack.c.bf16 %v452_v12, %v450_v11  ;;  %v372_v15 = vpop.f32.mrb[52].mxu0 }
 0x156   :  { %v373_v16 = vadd.f32 %v372_v15, %v1311_v2  ;;  %v374_v17 = vpop.f32.mrb[53].mxu0 }
 0x157   :  { %v375_v18 = vadd.f32 %v374_v17, %v1313_v19  ;;  %v376_v20 = vpop.f32.mrb[54].mxu0  ;;  %940 = vmatprep.mubr.msk.bf16.mxu1 %vm624_vm2, %v490_v14 }
 0x158   :  { %v377_v21 = vadd.f32 %v376_v20, %v1311_v2  ;;  %v378_v22 = vpop.f32.mrb[55].mxu0  ;;  %802 = vmatmul.mubr.bf16.gmra.mrb[40].mxu1 %v489_v13  ;;  %v453_v24 = vmax.f32 %v373_v16, 0.0 }
 0x159   :  { %v379_v23 = vadd.f32 %v378_v22, %v1313_v19  ;;  %v454_v26 = vmax.f32 %v375_v18, 0.0 }
 0x15a   :  { %v455_v25 = vmax.f32 %v377_v21, 0.0 }
 0x15b   :  { %v456_v27 = vmax.f32 %v379_v23, 0.0 }
 0x15c   :  { %v491_v28 = vpack.c.bf16 %v455_v25, %v453_v24 }
 0x15d   :  { %v492_v29 = vpack.c.bf16 %v456_v27, %v454_v26  ;;  %v382_v30 = vpop.f32.mrb[56].mxu0 }
 0x15e   :  { %v383_v31 = vadd.f32 %v382_v30, %v1311_v2  ;;  %v384_v32 = vpop.f32.mrb[57].mxu0 }
 0x15f   :  { %v385_v33 = vadd.f32 %v384_v32, %v1313_v19  ;;  %v386_v34 = vpop.f32.mrb[58].mxu0  ;;  %941 = vmatprep.mubr.msk.bf16.mxu1 %vm624_vm2, %v492_v29 }
 0x160   :  { %v387_v35 = vadd.f32 %v386_v34, %v1311_v2  ;;  %v388_v36 = vpop.f32.mrb[59].mxu0  ;;  %810 = vmatmul.mubr.bf16.gmra.mrb[44].mxu1 %v491_v28  ;;  %v457_v38 = vmax.f32 %v383_v31, 0.0 }
 0x161   :  { %v389_v37 = vadd.f32 %v388_v36, %v1313_v19  ;;  %v458_v40 = vmax.f32 %v385_v33, 0.0 }
 0x162   :  { %v459_v39 = vmax.f32 %v387_v35, 0.0 }
 0x163   :  { %v460_v41 = vmax.f32 %v389_v37, 0.0 }
 0x164   :  { %v493_v42 = vpack.c.bf16 %v459_v39, %v457_v38 }
 0x165   :  { %v494_v43 = vpack.c.bf16 %v460_v41, %v458_v40  ;;  %v392_v44 = vpop.f32.mrb[60].mxu0 }
 0x166   :  { %v393_v45 = vadd.f32 %v392_v44, %v1311_v2  ;;  %v394_v46 = vpop.f32.mrb[61].mxu0 }
 0x167   :  { %v395_v47 = vadd.f32 %v394_v46, %v1313_v19  ;;  %v396_v48 = vpop.f32.mrb[62].mxu0  ;;  %942 = vmatprep.mubr.msk.bf16.mxu1 %vm624_vm2, %v494_v43 }
 0x168   :  { %v397_v49 = vadd.f32 %v396_v48, %v1311_v2  ;;  %v398_v50 = vpop.f32.mrb[63].mxu0  ;;  %818 = vmatmul.mubr.bf16.gmra.mrb[48].mxu1 %v493_v42  ;;  %v461_v52 = vmax.f32 %v393_v45, 0.0 }
 0x169   :  { %v399_v51 = vadd.f32 %v398_v50, %v1313_v19  ;;  %v462_v54 = vmax.f32 %v395_v47, 0.0 }
 0x16a   :  { %v463_v53 = vmax.f32 %v397_v49, 0.0 }
 0x16b   :  { %v464_v55 = vmax.f32 %v399_v51, 0.0 }
 0x16c   :  { %v495_v56 = vpack.c.bf16 %v463_v53, %v461_v52 }
 0x16d   :  { %v496_v57 = vpack.c.bf16 %v464_v55, %v462_v54 }
 0x16f   :  { %943 = vmatprep.mubr.msk.bf16.mxu1 %vm624_vm2, %v496_v57 }
 0x170   :  { %826 = vmatmul.mubr.bf16.gmra.mrb[52].mxu1 %v495_v56 }
 0x1cb   :  { %v707_v59 = vpop.f32.mrb[64].mxu0 }
 0x1cc   :  { %v708_v2 = vadd.f32 %v1398_v58, %v707_v59  ;;  %v709_v60 = vpop.f32.mrb[65].mxu0 }
 0x1cd   :  { %v710_v19 = vpop.f32.mrb[66].mxu0 }
 0x1ce   :  { %835 = vst.msk [vmem:[#allocation2] sm:$0xff] %vm834_vm3, %v708_v2  ;;  %v711_v61 = vadd.f32 %v1398_v58, %v710_v19  ;;  %v712_v62 = vpop.f32.mrb[67].mxu0 }
 0x1d0   :  { %836 = vst.msk [vmem:[#allocation2 + $0x8] sm:$0xff] %vm834_vm3, %v711_v61 }
 0x1d3   :  { %v715_v63 = vpop.f32.mrb[68].mxu0 }
 0x1d4   :  { %v716_v0 = vadd.f32 %v1398_v58, %v715_v63  ;;  %v717_v1 = vpop.f32.mrb[69].mxu0 }
 0x1d5   :  { %v718_v3 = vpop.f32.mrb[70].mxu0 }
 0x1d6   :  { %837 = vst.msk [vmem:[#allocation2 + $0x10] sm:$0xff] %vm834_vm3, %v716_v0  ;;  %v719_v4 = vadd.f32 %v1398_v58, %v718_v3  ;;  %v720_v5 = vpop.f32.mrb[71].mxu0 }
 0x1d8   :  { %838 = vst.msk [vmem:[#allocation2 + $0x18] sm:$0xff] %vm834_vm3, %v719_v4 }
 0x1db   :  { %v723_v6 = vpop.f32.mrb[0].mxu1 }
 0x1dc   :  { %v724_v7 = vadd.f32 %v1398_v58, %v723_v6  ;;  %v725_v8 = vpop.f32.mrb[1].mxu1 }
 0x1dd   :  { %v726_v9 = vpop.f32.mrb[2].mxu1 }
 0x1de   :  { %839 = vst.msk [vmem:[#allocation2 + $0x20] sm:$0xff] %vm834_vm3, %v724_v7  ;;  %v727_v10 = vadd.f32 %v1398_v58, %v726_v9  ;;  %v728_v11 = vpop.f32.mrb[3].mxu1 }
 0x1e0   :  { %840 = vst.msk [vmem:[#allocation2 + $0x28] sm:$0xff] %vm834_vm3, %v727_v10 }
 0x1e3   :  { %v731_v12 = vpop.f32.mrb[4].mxu1 }
 0x1e4   :  { %v732_v13 = vadd.f32 %v1398_v58, %v731_v12  ;;  %v733_v14 = vpop.f32.mrb[5].mxu1 }
 0x1e5   :  { %v734_v15 = vpop.f32.mrb[6].mxu1 }
 0x1e6   :  { %841 = vst.msk [vmem:[#allocation2 + $0x30] sm:$0xff] %vm834_vm3, %v732_v13  ;;  %v735_v16 = vadd.f32 %v1398_v58, %v734_v15  ;;  %v736_v17 = vpop.f32.mrb[7].mxu1 }
 0x1e8   :  { %842 = vst.msk [vmem:[#allocation2 + $0x38] sm:$0xff] %vm834_vm3, %v735_v16 }
 0x1eb   :  { %v739_v18 = vpop.f32.mrb[8].mxu1 }
 0x1ec   :  { %v740_v20 = vadd.f32 %v1398_v58, %v739_v18  ;;  %v741_v21 = vpop.f32.mrb[9].mxu1 }
 0x1ed   :  { %v742_v22 = vpop.f32.mrb[10].mxu1 }
 0x1ee   :  { %843 = vst.msk [vmem:[#allocation2 + $0x40] sm:$0xff] %vm834_vm3, %v740_v20  ;;  %v743_v23 = vadd.f32 %v1398_v58, %v742_v22  ;;  %v744_v24 = vpop.f32.mrb[11].mxu1 }
 0x1f0   :  { %844 = vst.msk [vmem:[#allocation2 + $0x48] sm:$0xff] %vm834_vm3, %v743_v23 }
 0x1f3   :  { %v747_v25 = vpop.f32.mrb[12].mxu1 }
 0x1f4   :  { %v748_v26 = vadd.f32 %v1398_v58, %v747_v25  ;;  %v749_v27 = vpop.f32.mrb[13].mxu1 }
 0x1f5   :  { %v750_v28 = vpop.f32.mrb[14].mxu1 }
 0x1f6   :  { %845 = vst.msk [vmem:[#allocation2 + $0x50] sm:$0xff] %vm834_vm3, %v748_v26  ;;  %v751_v29 = vadd.f32 %v1398_v58, %v750_v28  ;;  %v752_v30 = vpop.f32.mrb[15].mxu1 }
 0x1f8   :  { %846 = vst.msk [vmem:[#allocation2 + $0x58] sm:$0xff] %vm834_vm3, %v751_v29 }
 0x1fb   :  { %v755_v31 = vpop.f32.mrb[16].mxu1 }
 0x1fc   :  { %v756_v32 = vadd.f32 %v1398_v58, %v755_v31  ;;  %v757_v33 = vpop.f32.mrb[17].mxu1 }
 0x1fd   :  { %v758_v34 = vpop.f32.mrb[18].mxu1 }
 0x1fe   :  { %847 = vst.msk [vmem:[#allocation2 + $0x60] sm:$0xff] %vm834_vm3, %v756_v32  ;;  %v759_v35 = vadd.f32 %v1398_v58, %v758_v34  ;;  %v760_v36 = vpop.f32.mrb[19].mxu1 }
 0x200   :  { %848 = vst.msk [vmem:[#allocation2 + $0x68] sm:$0xff] %vm834_vm3, %v759_v35 }
 0x203   :  { %v763_v37 = vpop.f32.mrb[20].mxu1 }
 0x204   :  { %v764_v38 = vadd.f32 %v1398_v58, %v763_v37  ;;  %v765_v39 = vpop.f32.mrb[21].mxu1 }
 0x205   :  { %v766_v40 = vpop.f32.mrb[22].mxu1 }
 0x206   :  { %849 = vst.msk [vmem:[#allocation2 + $0x70] sm:$0xff] %vm834_vm3, %v764_v38  ;;  %v767_v41 = vadd.f32 %v1398_v58, %v766_v40  ;;  %v768_v42 = vpop.f32.mrb[23].mxu1 }
 0x208   :  { %850 = vst.msk [vmem:[#allocation2 + $0x78] sm:$0xff] %vm834_vm3, %v767_v41 }
 0x20b   :  { %v771_v43 = vpop.f32.mrb[24].mxu1 }
 0x20c   :  { %v772_v44 = vadd.f32 %v1398_v58, %v771_v43  ;;  %v773_v45 = vpop.f32.mrb[25].mxu1 }
 0x20d   :  { %v774_v46 = vpop.f32.mrb[26].mxu1 }
 0x20e   :  { %851 = vst.msk [vmem:[#allocation2 + $0x80] sm:$0xff] %vm834_vm3, %v772_v44  ;;  %v775_v47 = vadd.f32 %v1398_v58, %v774_v46  ;;  %v776_v48 = vpop.f32.mrb[27].mxu1 }
 0x210   :  { %852 = vst.msk [vmem:[#allocation2 + $0x88] sm:$0xff] %vm834_vm3, %v775_v47 }
 0x213   :  { %v779_v49 = vpop.f32.mrb[28].mxu1 }
 0x214   :  { %v780_v50 = vadd.f32 %v1398_v58, %v779_v49  ;;  %v781_v51 = vpop.f32.mrb[29].mxu1 }
 0x215   :  { %v782_v52 = vpop.f32.mrb[30].mxu1 }
 0x216   :  { %853 = vst.msk [vmem:[#allocation2 + $0x90] sm:$0xff] %vm834_vm3, %v780_v50  ;;  %v783_v53 = vadd.f32 %v1398_v58, %v782_v52  ;;  %v784_v54 = vpop.f32.mrb[31].mxu1 }
 0x218   :  { %854 = vst.msk [vmem:[#allocation2 + $0x98] sm:$0xff] %vm834_vm3, %v783_v53 }
 0x21b   :  { %v787_v55 = vpop.f32.mrb[32].mxu1 }
 0x21c   :  { %v788_v56 = vadd.f32 %v1398_v58, %v787_v55  ;;  %v789_v57 = vpop.f32.mrb[33].mxu1 }
 0x21d   :  { %v790_v59 = vpop.f32.mrb[34].mxu1 }
 0x21e   :  { %855 = vst.msk [vmem:[#allocation2 + $0xa0] sm:$0xff] %vm834_vm3, %v788_v56  ;;  %v791_v2 = vadd.f32 %v1398_v58, %v790_v59  ;;  %v792_v60 = vpop.f32.mrb[35].mxu1 }
 0x220   :  { %856 = vst.msk [vmem:[#allocation2 + $0xa8] sm:$0xff] %vm834_vm3, %v791_v2 }
 0x223   :  { %v795_v19 = vpop.f32.mrb[36].mxu1 }
 0x224   :  { %v796_v61 = vadd.f32 %v1398_v58, %v795_v19  ;;  %v797_v62 = vpop.f32.mrb[37].mxu1 }
 0x225   :  { %v798_v63 = vpop.f32.mrb[38].mxu1 }
 0x226   :  { %857 = vst.msk [vmem:[#allocation2 + $0xb0] sm:$0xff] %vm834_vm3, %v796_v61  ;;  %v799_v0 = vadd.f32 %v1398_v58, %v798_v63  ;;  %v800_v1 = vpop.f32.mrb[39].mxu1 }
 0x228   :  { %858 = vst.msk [vmem:[#allocation2 + $0xb8] sm:$0xff] %vm834_vm3, %v799_v0 }
 0x22b   :  { %v803_v3 = vpop.f32.mrb[40].mxu1 }
 0x22c   :  { %v804_v4 = vadd.f32 %v1398_v58, %v803_v3  ;;  %v805_v5 = vpop.f32.mrb[41].mxu1 }
 0x22d   :  { %v806_v6 = vpop.f32.mrb[42].mxu1 }
 0x22e   :  { %859 = vst.msk [vmem:[#allocation2 + $0xc0] sm:$0xff] %vm834_vm3, %v804_v4  ;;  %v807_v7 = vadd.f32 %v1398_v58, %v806_v6  ;;  %v808_v8 = vpop.f32.mrb[43].mxu1 }
 0x230   :  { %860 = vst.msk [vmem:[#allocation2 + $0xc8] sm:$0xff] %vm834_vm3, %v807_v7 }
 0x233   :  { %v811_v9 = vpop.f32.mrb[44].mxu1 }
 0x234   :  { %v812_v10 = vadd.f32 %v1398_v58, %v811_v9  ;;  %v813_v11 = vpop.f32.mrb[45].mxu1 }
 0x235   :  { %v814_v12 = vpop.f32.mrb[46].mxu1 }
 0x236   :  { %861 = vst.msk [vmem:[#allocation2 + $0xd0] sm:$0xff] %vm834_vm3, %v812_v10  ;;  %v815_v13 = vadd.f32 %v1398_v58, %v814_v12  ;;  %v816_v14 = vpop.f32.mrb[47].mxu1 }
 0x238   :  { %862 = vst.msk [vmem:[#allocation2 + $0xd8] sm:$0xff] %vm834_vm3, %v815_v13 }
 0x23b   :  { %v819_v15 = vpop.f32.mrb[48].mxu1 }
 0x23c   :  { %v820_v16 = vadd.f32 %v1398_v58, %v819_v15  ;;  %v821_v17 = vpop.f32.mrb[49].mxu1 }
 0x23d   :  { %v822_v18 = vpop.f32.mrb[50].mxu1 }
 0x23e   :  { %863 = vst.msk [vmem:[#allocation2 + $0xe0] sm:$0xff] %vm834_vm3, %v820_v16  ;;  %v823_v20 = vadd.f32 %v1398_v58, %v822_v18  ;;  %v824_v21 = vpop.f32.mrb[51].mxu1 }
 0x240   :  { %864 = vst.msk [vmem:[#allocation2 + $0xe8] sm:$0xff] %vm834_vm3, %v823_v20 }
 0x243   :  { %v827_v22 = vpop.f32.mrb[52].mxu1 }
 0x244   :  { %v828_v23 = vadd.f32 %v1398_v58, %v827_v22  ;;  %v829_v24 = vpop.f32.mrb[53].mxu1 }
 0x245   :  { %v830_v25 = vpop.f32.mrb[54].mxu1 }
 0x246   :  { %865 = vst.msk [vmem:[#allocation2 + $0xf0] sm:$0xff] %vm834_vm3, %v828_v23  ;;  %v831_v26 = vadd.f32 %v1398_v58, %v830_v25  ;;  %v832_v27 = vpop.f32.mrb[55].mxu1 }
 0x248   :  { %866 = vst.msk [vmem:[#allocation2 + $0xf8] sm:$0xff] %vm834_vm3, %v831_v26 }
 0x249   :  { %871 = vsyncadd [#allocation3], 4080  ;;  %s1036_s4 = smov [#allocation2]  }
 0x24a   :  { %s872_s8 = sshll.u32 %s1036_s4, 4  ;;  %s873_s8 = int_to_ptr.vmem [resolvable:$true] %s872_s8 }
 0x24b   :  { %s1011_s9 = scalar_lea.vmem %s873_s8, 16  ;;  %s1015_s10 = scalar_lea.vmem %s873_s8, 4096 }
 0x24c   :  { %p1012_p0 = scmp.ne.s32.totalorder %s873_s8, %s1011_s9  ;;  %p1016_p1 = scmp.lt.s32.totalorder %s873_s8, %s873_s8 }
 0x24d   :  { %p1017_p2 = scmp.lt.s32.totalorder %s1015_s10, %s1011_s9 }
 0x24f   :  { %p1018_p3 = por %p1017_p2, %p1016_p1 }
 0x251   :  { %p1019_p4 = pnand %p1018_p3, %p1012_p0 }
 0x253   :  { %1022 = shalt.err (!%p1019_p4)
}
 0x254   :  { %s1023_s13 = scalar_lea.hbm %s1481_s5, 16 }
 0x255   :  { %p1024_p5 = scmp.ne.s32.totalorder %s1481_s5, %s1023_s13  ;;  %p1027_p6 = scmp.lt.u32.totalorder %s1023_s13, %s1481_s5 }
 0x257   :  { %p1029_p7 = pnand %p1027_p6, %p1024_p5 }
 0x259   :  { %1032 = shalt.err (!%p1029_p7)
}
 0x25a   :  { %s1037_s18 = smov 16   ;;  %s1038_s19 = smov 1  }
 0x25b   :  { %878 = dma.vmem_to_hbm [thread:$0]  %s873_s8, 16, %s1481_s5, [#allocation3], %s1037_s18, %s1037_s18, %s1038_s19  }
 0x25c   :  { %1033 = dma.done.wait [#allocation3], 4096  }
 0x25d   :  { %1034 = vsyncadd [#allocation3], 4294963200 }
 0x25e   :  { %882 = vsyncpa [#allocation3], 1 }

</bundles_post_ra>
